<compile_context>
chip_gen: v6e
topology: v6e:2x2x1
jax: 0.10.0
libtpu: 0.0.40
codegen_flags: <defaults>
</compile_context>

<pallas_src>
import jax
import jax.numpy as jnp
from jax.experimental import pallas as pl
from jax.experimental.pallas import tpu as pltpu


def conv1x1_kernel(w_ref, x_ref, o_ref, acc_ref):
    # w_ref:   (Cout, tk)      current Cin-block of the weight matrix
    # x_ref:   (1, tk, M)      current (batch, Cin-block) slab of the input
    # o_ref:   (1, Cout, M)    output slab for this batch element
    # acc_ref: (Cout, M) f32   accumulator, resident across the Cin grid axis
    k = pl.program_id(1)

    @pl.when(k == 0)
    def _():
        acc_ref[...] = jnp.zeros_like(acc_ref)

    acc_ref[...] += jnp.dot(
        w_ref[...], x_ref[0], preferred_element_type=jnp.float32
    )

    @pl.when(k == pl.num_programs(1) - 1)
    def _():
        o_ref[0] = acc_ref[...].astype(o_ref.dtype)


def conv2d_1x1(x_nchw, weight_oikk, *, tk=128):
    """1x1 conv, stride 1, no bias.  x: [N, Cin, H, W], weight: [Cout, Cin, 1, 1]."""
    N, Cin, H, W = x_nchw.shape
    Cout = weight_oikk.shape[0]
    M = H * W

    # Zero-copy NCHW reshapes: X -> (N, Cin, M), W -> (Cout, Cin).
    x_mat = x_nchw.reshape(N, Cin, M)
    w_mat = weight_oikk.reshape(Cout, Cin)

    # Cin is W's lane dim, so the K block must be a multiple of 128 that divides
    # Cin; otherwise fall back to a single full-K block.
    if tk % 128 != 0 or Cin % tk != 0:
        tk = Cin
    kt = Cin // tk

    itemsize = jnp.dtype(x_mat.dtype).itemsize
    cost = pl.CostEstimate(
        flops=2 * N * M * Cin * Cout,
        transcendentals=0,
        bytes_accessed=(N * Cin * M + Cout * Cin + N * Cout * M) * itemsize,
    )

    out = pl.pallas_call(
        conv1x1_kernel,
        out_shape=jax.ShapeDtypeStruct((N, Cout, M), x_mat.dtype),
        grid_spec=pltpu.PrefetchScalarGridSpec(
            num_scalar_prefetch=0,
            grid=(N, kt),  # batch (parallel) x Cin reduction (arbitrary, last)
            in_specs=[
                pl.BlockSpec((Cout, tk), lambda n, k: (0, k)),
                pl.BlockSpec((1, tk, M), lambda n, k: (n, k, 0)),
            ],
            out_specs=pl.BlockSpec((1, Cout, M), lambda n, k: (n, 0, 0)),
            scratch_shapes=[pltpu.VMEM((Cout, M), jnp.float32)],
        ),
        compiler_params=pltpu.CompilerParams(
            dimension_semantics=("parallel", "arbitrary"),
        ),
        cost_estimate=cost,
    )(w_mat, x_mat)

    return out.reshape(N, Cout, H, W)


if __name__ == "__main__":
    key = jax.random.PRNGKey(0)
    kx, kw = jax.random.split(key)

    # Shapes from the module: input [1, 384, 28, 28], Conv2d(384, 64, 1x1, bias=False).
    N, Cin, H, W, Cout = 1, 384, 28, 28, 64
    x = jax.random.normal(kx, (N, Cin, H, W), dtype=jnp.float32)
    weight = jax.random.normal(kw, (Cout, Cin, 1, 1), dtype=jnp.float32) * 0.05

    y = conv2d_1x1(x, weight)
    y = jax.block_until_ready(y)

    # Reference check (plain JAX einsum over the 1x1 conv).
    y_ref = jnp.einsum("nchw,oc->nohw", x, weight.reshape(Cout, Cin))
    assert y.shape == (N, Cout, H, W), y.shape
    assert jnp.allclose(y, y_ref, atol=1e-4, rtol=1e-4), float(
        jnp.max(jnp.abs(y - y_ref))
    )

    print("KERNEL_OK")
</pallas_src>

<mosaic_0001>
module attributes {stable_mosaic.version = 11 : i64} {
  func.func @conv1x1_kernel(%arg0: i32, %arg1: i32, %arg2: memref<64x128xf32, #tpu.memory_space<vmem>>, %arg3: memref<1x128x784xf32, #tpu.memory_space<vmem>>, %arg4: memref<1x64x784xf32, #tpu.memory_space<vmem>>, %arg5: memref<64x784xf32, #tpu.memory_space<vmem>>) attributes {dimension_semantics = [#tpu.dimension_semantics<parallel>, #tpu.dimension_semantics<arbitrary>], iteration_bounds = array<i64: 1, 3>, scalar_prefetch = 0 : i64, scratch_operands = 1 : i64, tpu.core_type = #tpu.core_type<tc>, window_params = [{transform_indices = @transform_0, window_bounds = array<i64: 64, 128>}, {transform_indices = @transform_1, window_bounds = array<i64: 1, 128, 784>}, {transform_indices = @transform_2, window_bounds = array<i64: 1, 64, 784>}]} {
    %c0_i32 = arith.constant 0 : i32
    %0 = arith.cmpi eq, %arg1, %c0_i32 : i32
    %1 = arith.extui %0 : i1 to i32
    %c0_i32_0 = arith.constant 0 : i32
    %2 = arith.cmpi ne, %1, %c0_i32_0 : i32
    scf.if %2 {
      %cst_10 = arith.constant 0.000000e+00 : f32
      %13 = vector.broadcast %cst_10 : f32 to vector<64x784xf32>
      %c0_11 = arith.constant 0 : index
      %c0_12 = arith.constant 0 : index
      %14 = vector.load %arg5[%c0_11, %c0_12] : memref<64x784xf32, #tpu.memory_space<vmem>>, vector<64x784xf32>
      tpu.vector_store %arg5[%c0_11, %c0_12], %13 {strides = array<i32>} : memref<64x784xf32, #tpu.memory_space<vmem>>, vector<64x784xf32>,
    } else {
    }
    %c0 = arith.constant 0 : index
    %c0_1 = arith.constant 0 : index
    %3 = vector.load %arg5[%c0, %c0_1] : memref<64x784xf32, #tpu.memory_space<vmem>>, vector<64x784xf32>
    %c0_2 = arith.constant 0 : index
    %c0_3 = arith.constant 0 : index
    %4 = vector.load %arg2[%c0_2, %c0_3] : memref<64x128xf32, #tpu.memory_space<vmem>>, vector<64x128xf32>
    %c0_4 = arith.constant 0 : index
    %c0_5 = arith.constant 0 : index
    %c0_6 = arith.constant 0 : index
    %5 = vector.load %arg3[%c0_4, %c0_5, %c0_6] : memref<1x128x784xf32, #tpu.memory_space<vmem>>, vector<1x128x784xf32>
    %6 = vector.shape_cast %5 : vector<1x128x784xf32> to vector<128x784xf32>
    %cst = arith.constant dense<0.000000e+00> : vector<64x784xf32>
    %7 = tpu.matmul %4, %6, %cst {dimension_numbers = #tpu.dot_dimension_numbers<[1], [0], [0], [1], [0, 0, 1, 1], [], []>} : vector<64x128xf32>, vector<128x784xf32>, vector<64x784xf32> -> vector<64x784xf32>
    %8 = arith.addf %3, %7 : vector<64x784xf32>
    %c0_7 = arith.constant 0 : index
    %c0_8 = arith.constant 0 : index
    %9 = vector.load %arg5[%c0_7, %c0_8] : memref<64x784xf32, #tpu.memory_space<vmem>>, vector<64x784xf32>
    tpu.vector_store %arg5[%c0_7, %c0_8], %8 {strides = array<i32>} : memref<64x784xf32, #tpu.memory_space<vmem>>, vector<64x784xf32>,
    %c2_i32 = arith.constant 2 : i32
    %10 = arith.cmpi eq, %arg1, %c2_i32 : i32
    %11 = arith.extui %10 : i1 to i32
    %c0_i32_9 = arith.constant 0 : i32
    %12 = arith.cmpi ne, %11, %c0_i32_9 : i32
    scf.if %12 {
      %c0_10 = arith.constant 0 : index
      %c0_11 = arith.constant 0 : index
      %13 = vector.load %arg5[%c0_10, %c0_11] : memref<64x784xf32, #tpu.memory_space<vmem>>, vector<64x784xf32>
      %c0_12 = arith.constant 0 : index
      %c0_13 = arith.constant 0 : index
      %c0_14 = arith.constant 0 : index
      %14 = vector.load %arg4[%c0_12, %c0_13, %c0_14] : memref<1x64x784xf32, #tpu.memory_space<vmem>>, vector<1x64x784xf32>
      %15 = vector.shape_cast %14 : vector<1x64x784xf32> to vector<64x784xf32>
      %16 = vector.shape_cast %13 : vector<64x784xf32> to vector<1x64x784xf32>
      tpu.vector_store %arg4[%c0_12, %c0_13, %c0_14], %16 {strides = array<i32>} : memref<1x64x784xf32, #tpu.memory_space<vmem>>, vector<1x64x784xf32>,
    } else {
    }
    return
  }
  func.func @transform_0(%arg0: i32, %arg1: i32) -> (i32, i32) {
    %c0_i32 = arith.constant 0 : i32
    %c0_i32_0 = arith.constant 0 : i32
    return %c0_i32, %arg1 : i32, i32
  }
  func.func @transform_1(%arg0: i32, %arg1: i32) -> (i32, i32, i32) {
    %c0_i32 = arith.constant 0 : i32
    %c0_i32_0 = arith.constant 0 : i32
    return %arg0, %arg1, %c0_i32 : i32, i32, i32
  }
  func.func @transform_2(%arg0: i32, %arg1: i32) -> (i32, i32, i32) {
    %c0_i32 = arith.constant 0 : i32
    %c0_i32_0 = arith.constant 0 : i32
    %c0_i32_1 = arith.constant 0 : i32
    return %arg0, %c0_i32, %c0_i32_0 : i32, i32, i32
  }
}

</mosaic_0001>

<bundles_post_ra>
// kernel: tpu_custom_call.1
= control target key start
LH: loop header
LB: loop body
LE: loop exit
PB: predicated region body
PF: predicated region fallthrough
CT: control target
= control target key end

     0   :  { %7 = vsyncpa [#allocation5], 0  ;;  %s1471_s9 = smov 0   ;;  %s1473_s10 = smov 0   ;;  %s1776_s0 = inlined_call_operand.vmem [shape: f32[64,384], index: 0, kind: input, shape index: {}]   ;;  %s1777_s1 = inlined_call_operand.vmem [shape: f32[1,384,784], index: 1, kind: input, shape index: {}]   ;;  %s1778_s2 = inlined_call_operand.hbm [shape: f32[1,64,784], index: 2, kind: output, shape index: {}]  }
   0x1   :  { %s1475_s11 = smov 0   ;;  %s1477_s12 = smov 0  }
   0x2   :  { %s1479_s13 = smov 0  }
   0x3 LB: > { %s1248_s14 = sadd.s32 4294967295, %s1449_s13   ;;  %s22_s15 = sadd.s32 1, %s1445_s12  ;;  %s1449_s13 = sphi %s1479_s13, %s13_s13   ;;  %s1445_s12 = sphi %s1477_s12, %s1783_s12   ;;  %s1441_s11 = sphi %s1475_s11, %s1782_s11   ;;  %s1437_s10 = sphi %s1473_s10, %s1781_s10   ;;  %s1433_s9 = sphi %s1471_s9, %s1780_s9  }
   0x4   : > { %p23_p0 = scmp.ge.s32.totalorder %s22_s15, 3  ;;  %p39_p1 = scmp.ne.s32.totalorder %s1437_s10, %s1433_s9 }
   0x5   : > { %p40_p2 = scmp.eq.s32.totalorder %s1449_s13, 0  ;;  %s32_s17 = sadd.s32 1, %s1437_s10 }
   0x6   : > { %s1785_s15 = smov (%p23_p0, %s22_s15), 0  ;;  %p1250_p5 = scmp.ge.s32.totalorder %s1449_s13, 3 }
   0x7   : > { %p41_p3 = por %p40_p2, %p39_p1  ;;  %s29_s16 = ssub.s32 %s1445_s12, %s1785_s15 }
   0x8   : > { %p30_p4 = scmp.eq.s32.totalorder %s29_s16, 0  ;;  %119 = sbr.rel (%p1250_p5) target bundleno = 21 (0x15), region = 16 }
   0xa   : > { %s1507_s18 = scalar_select %p30_p4, %s1437_s10, %s32_s17  }
   0xd   : > { %122 = sbr.rel (!%p41_p3) target bundleno = 21 (0x15), region = 20  ;;  %s124_s19 = sand.u32 (%p41_p3), 1, %s1437_s10  }
   0xe   : > { %s1252_s20 = sshll.u32 (%p41_p3), %s1445_s12, 3  ;;  %s1251_s21 = sshll.u32 (%p41_p3), %s124_s19, 6 }
   0xf   : > { %s128_s24 = scalar_lea.vmem (%p41_p3), %s1776_s0, %s1252_s20  ;;  %s126_s25 = scalar_lea.vmem (%p41_p3), [#allocation3], %s1251_s21 }
  0x10   : > { %v171_v0 = vld [vmem:[%s128_s24] sm:$0xff] (%p41_p3)  ;;  %v173_v1 = vld [vmem:[%s128_s24 + $0x18] sm:$0xff] (%p41_p3)  ;;  %v175_v2 = vld [vmem:[%s128_s24 + $0x30] sm:$0xff] (%p41_p3) }
  0x11   : > { %172 = vst [vmem:[%s126_s25] sm:$0xff] (%p41_p3), %v171_v0  ;;  %174 = vst [vmem:[%s126_s25 + $0x8] sm:$0xff] (%p41_p3), %v173_v1  ;;  %v177_v3 = vld [vmem:[%s128_s24 + $0x48] sm:$0xff] (%p41_p3)  ;;  %v179_v4 = vld [vmem:[%s128_s24 + $0x60] sm:$0xff] (%p41_p3) }
  0x12   : > { %176 = vst [vmem:[%s126_s25 + $0x10] sm:$0xff] %v175_v2  ;;  %v181_v5 = vld [vmem:[%s128_s24 + $0x78] sm:$0xff]  ;;  %178 = vst [vmem:[%s126_s25 + $0x18] sm:$0xff] %v177_v3  ;;  %v183_v6 = vld [vmem:[%s128_s24 + $0x90] sm:$0xff] }
  0x13   : > { %180 = vst [vmem:[%s126_s25 + $0x20] sm:$0xff] %v179_v4  ;;  %182 = vst [vmem:[%s126_s25 + $0x28] sm:$0xff] %v181_v5  ;;  %v185_v7 = vld [vmem:[%s128_s24 + $0xa8] sm:$0xff] }
  0x14   : > { %184 = vst [vmem:[%s126_s25 + $0x30] sm:$0xff] %v183_v6  ;;  %186 = vst [vmem:[%s126_s25 + $0x38] sm:$0xff] %v185_v7 }
  0x15 PF: > { %p1253_p6 = scmp.ge.s32.totalorder %s1449_s13, 1  ;;  %p205_p7 = scmp.lt.s32.totalorder %s1449_s13, 4 }
  0x17   : > { %p206_p8 = pnand %p1253_p6, %p205_p7 }
  0x18   : > { %s212_s26 = sand.u32 (!%p206_p8), 1, %s1433_s9   ;;  %s1255_s27 = sshll.u32 (!%p206_p8), %s1441_s11, 4 }
  0x19   : > { %209 = sbr.rel (%p206_p8) target bundleno = 407 (0x197), region = 62  ;;  %s1254_s28 = sshll.u32 (!%p206_p8), %s212_s26, 6 }
  0x1a   : > { %p241_p9 = scmp.lt.s32.totalorder (!%p206_p8), %s1255_s27, 47  ;;  %s1524_s5 = scalar_lea.vmem (!%p206_p8), [#allocation3], %s1254_s28 }
  0x1b   : > { %p1257_p10 = scmp.ne.s32.totalorder (!%p206_p8), %s1441_s11, 0 }
  0x1e   : > { %s1787_s27 = smov (!%p241_p9, %s1255_s27), 47  ;;  %252 = sbr.rel (%p1257_p10) target bundleno = 64 (0x40), region = 70 }
  0x1f   : > { %s1331_s29 = smul.u32 56, %s1787_s27 }
  0x21   : > { %s1522_s4 = scalar_lea.vmem %s1777_s1, %s1331_s29 }
  0x23   : > { %vm259_vm0 = vcmask 130048   ;;  %v1451_v8 = vmov 0.0  }
  0x24   : > { %253 = vst [vmem:[#allocation2] sm:$0xff] %v1451_v8  ;;  %254 = vst [vmem:[#allocation2 + $0x8] sm:$0xff] %v1451_v8 }
  0x25   : > { %255 = vst [vmem:[#allocation2 + $0x10] sm:$0xff] %v1451_v8  ;;  %256 = vst [vmem:[#allocation2 + $0x18] sm:$0xff] %v1451_v8 }
  0x26   : > { %257 = vst [vmem:[#allocation2 + $0x20] sm:$0xff] %v1451_v8  ;;  %258 = vst [vmem:[#allocation2 + $0x28] sm:$0xff] %v1451_v8 }
  0x27   : > { %261 = vst [vmem:[#allocation2 + $0x38] sm:$0xff] %v1451_v8  ;;  %262 = vst [vmem:[#allocation2 + $0x40] sm:$0xff] %v1451_v8 }
  0x28   : > { %263 = vst [vmem:[#allocation2 + $0x48] sm:$0xff] %v1451_v8  ;;  %264 = vst [vmem:[#allocation2 + $0x50] sm:$0xff] %v1451_v8 }
  0x29   : > { %265 = vst [vmem:[#allocation2 + $0x58] sm:$0xff] %v1451_v8  ;;  %266 = vst [vmem:[#allocation2 + $0x60] sm:$0xff] %v1451_v8 }
  0x2a   : > { %268 = vst [vmem:[#allocation2 + $0x70] sm:$0xff] %v1451_v8  ;;  %269 = vst [vmem:[#allocation2 + $0x78] sm:$0xff] %v1451_v8 }
  0x2b   : > { %270 = vst [vmem:[#allocation2 + $0x80] sm:$0xff] %v1451_v8  ;;  %271 = vst [vmem:[#allocation2 + $0x88] sm:$0xff] %v1451_v8 }
  0x2c   : > { %272 = vst [vmem:[#allocation2 + $0x90] sm:$0xff] %v1451_v8  ;;  %273 = vst [vmem:[#allocation2 + $0x98] sm:$0xff] %v1451_v8 }
  0x2d   : > { %275 = vst [vmem:[#allocation2 + $0xa8] sm:$0xff] %v1451_v8  ;;  %276 = vst [vmem:[#allocation2 + $0xb0] sm:$0xff] %v1451_v8 }
  0x2e   : > { %277 = vst [vmem:[#allocation2 + $0xb8] sm:$0xff] %v1451_v8  ;;  %278 = vst [vmem:[#allocation2 + $0xc0] sm:$0xff] %v1451_v8 }
  0x2f   : > { %279 = vst [vmem:[#allocation2 + $0xc8] sm:$0xff] %v1451_v8  ;;  %280 = vst [vmem:[#allocation2 + $0xd0] sm:$0xff] %v1451_v8 }
  0x30   : > { %282 = vst [vmem:[#allocation2 + $0xe0] sm:$0xff] %v1451_v8  ;;  %283 = vst [vmem:[#allocation2 + $0xe8] sm:$0xff] %v1451_v8 }
  0x31   : > { %284 = vst [vmem:[#allocation2 + $0xf0] sm:$0xff] %v1451_v8  ;;  %285 = vst [vmem:[#allocation2 + $0xf8] sm:$0xff] %v1451_v8 }
  0x32   : > { %286 = vst [vmem:[#allocation2 + $0x100] sm:$0xff] %v1451_v8  ;;  %287 = vst [vmem:[#allocation2 + $0x108] sm:$0xff] %v1451_v8 }
  0x33   : > { %289 = vst [vmem:[#allocation2 + $0x118] sm:$0xff] %v1451_v8  ;;  %290 = vst [vmem:[#allocation2 + $0x120] sm:$0xff] %v1451_v8 }
  0x34   : > { %291 = vst [vmem:[#allocation2 + $0x128] sm:$0xff] %v1451_v8  ;;  %292 = vst [vmem:[#allocation2 + $0x130] sm:$0xff] %v1451_v8 }
  0x35   : > { %293 = vst [vmem:[#allocation2 + $0x138] sm:$0xff] %v1451_v8  ;;  %294 = vst [vmem:[#allocation2 + $0x140] sm:$0xff] %v1451_v8 }
  0x36   : > { %296 = vst [vmem:[#allocation2 + $0x150] sm:$0xff] %v1451_v8  ;;  %297 = vst [vmem:[#allocation2 + $0x158] sm:$0xff] %v1451_v8 }
  0x37   : > { %298 = vst [vmem:[#allocation2 + $0x160] sm:$0xff] %v1451_v8  ;;  %299 = vst [vmem:[#allocation2 + $0x168] sm:$0xff] %v1451_v8 }
  0x38   : > { %300 = vst [vmem:[#allocation2 + $0x170] sm:$0xff] %v1451_v8  ;;  %301 = vst [vmem:[#allocation2 + $0x178] sm:$0xff] %v1451_v8 }
  0x39   : > { %303 = vst [vmem:[#allocation2 + $0x188] sm:$0xff] %v1451_v8  ;;  %304 = vst [vmem:[#allocation2 + $0x190] sm:$0xff] %v1451_v8 }
  0x3a   : > { %305 = vst [vmem:[#allocation2 + $0x198] sm:$0xff] %v1451_v8  ;;  %306 = vst [vmem:[#allocation2 + $0x1a0] sm:$0xff] %v1451_v8 }
  0x3b   : > { %307 = vst [vmem:[#allocation2 + $0x1a8] sm:$0xff] %v1451_v8  ;;  %308 = vst [vmem:[#allocation2 + $0x1b0] sm:$0xff] %v1451_v8 }
  0x3c   : > { %260 = vst.msk [vmem:[#allocation2 + $0x30] sm:$0xff] %vm259_vm0, %v1451_v8  ;;  %267 = vst.msk [vmem:[#allocation2 + $0x68] sm:$0xff] %vm259_vm0, %v1451_v8 }
  0x3d   : > { %274 = vst.msk [vmem:[#allocation2 + $0xa0] sm:$0xff] %vm259_vm0, %v1451_v8  ;;  %281 = vst.msk [vmem:[#allocation2 + $0xd8] sm:$0xff] %vm259_vm0, %v1451_v8 }
  0x3e   : > { %288 = vst.msk [vmem:[#allocation2 + $0x110] sm:$0xff] %vm259_vm0, %v1451_v8  ;;  %295 = vst.msk [vmem:[#allocation2 + $0x148] sm:$0xff] %vm259_vm0, %v1451_v8 }
  0x3f   : > { %302 = vst.msk [vmem:[#allocation2 + $0x180] sm:$0xff] %vm259_vm0, %v1451_v8  ;;  %309 = vst.msk [vmem:[#allocation2 + $0x1b8] sm:$0xff] %vm259_vm0, %v1451_v8 }
  0x40 PF: > { %v480_v9 = vld [vmem:[%s1522_s4 + $0x350] sm:$0xff]  ;;  %v479_v10 = vld [vmem:[%s1522_s4 + $0x348] sm:$0xff]  ;;  %v473_v11 = vld [vmem:[%s1522_s4 + $0x318] sm:$0xff]  ;;  %v1452_v13 = vmov 0.0   ;;  %vm992_vm1 = vcmask 130048   ;;  %p1258_p11 = scmp.ne.s32.totalorder %s1441_s11, 2 }
  0x41   : > { %486 = vmatprep.subr.mxu0 %v480_v9  ;;  %v472_v12 = vld [vmem:[%s1522_s4 + $0x310] sm:$0xff]  ;;  %550 = vmatprep.mubr.f32.mxu0 %v1452_v13  ;;  %v466_v14 = vld [vmem:[%s1522_s4 + $0x2e0] sm:$0xff]  ;;  %v465_v15 = vld [vmem:[%s1522_s4 + $0x2d8] sm:$0xff] }
  0x42   : > { %487 = vmatpush1.msra.mxu0 %v479_v10  ;;  %663 = vmatprep.mubr.f32.mxu1 %v1452_v13  ;;  %v459_v16 = vld [vmem:[%s1522_s4 + $0x2a8] sm:$0xff]  ;;  %v458_v17 = vld [vmem:[%s1522_s4 + $0x2a0] sm:$0xff]  ;;  %v452_v19 = vld [vmem:[%s1522_s4 + $0x270] sm:$0xff] }
  0x43   : > { %488 = vmatprep.subr.mxu0 %v473_v11  ;;  %v482_v18 = vld [vmem:[%s1522_s4 + $0x360] sm:$0xff]  ;;  %v481_v20 = vld [vmem:[%s1522_s4 + $0x358] sm:$0xff]  ;;  %v475_v21 = vld [vmem:[%s1522_s4 + $0x328] sm:$0xff] }
  0x44   : > { %489 = vmatpush1.msra.mxu0 %v472_v12  ;;  %599 = vmatprep.subr.mxu1 %v482_v18  ;;  %v451_v22 = vld [vmem:[%s1522_s4 + $0x268] sm:$0xff]  ;;  %v474_v23 = vld [vmem:[%s1522_s4 + $0x320] sm:$0xff]  ;;  %v445_v24 = vld [vmem:[%s1522_s4 + $0x238] sm:$0xff] }
  0x45   : > { %490 = vmatprep.subr.mxu0 %v466_v14  ;;  %600 = vmatpush1.msra.mxu1 %v481_v20  ;;  %v468_v25 = vld [vmem:[%s1522_s4 + $0x2f0] sm:$0xff]  ;;  %v467_v26 = vld [vmem:[%s1522_s4 + $0x2e8] sm:$0xff]  ;;  %v461_v28 = vld [vmem:[%s1522_s4 + $0x2b8] sm:$0xff] }
  0x46   : > { %491 = vmatpush1.msra.mxu0 %v465_v15  ;;  %601 = vmatprep.subr.mxu1 %v475_v21  ;;  %v444_v27 = vld [vmem:[%s1522_s4 + $0x230] sm:$0xff]  ;;  %v438_v29 = vld [vmem:[%s1522_s4 + $0x200] sm:$0xff]  ;;  %v437_v31 = vld [vmem:[%s1522_s4 + $0x1f8] sm:$0xff] }
  0x47   : > { %492 = vmatprep.subr.mxu0 %v459_v16  ;;  %602 = vmatpush1.msra.mxu1 %v474_v23  ;;  %v460_v30 = vld [vmem:[%s1522_s4 + $0x2b0] sm:$0xff]  ;;  %v454_v32 = vld [vmem:[%s1522_s4 + $0x280] sm:$0xff]  ;;  %v431_v33 = vld [vmem:[%s1522_s4 + $0x1c8] sm:$0xff] }
  0x48   : > { %493 = vmatpush1.msra.mxu0 %v458_v17  ;;  %603 = vmatprep.subr.mxu1 %v468_v25  ;;  %v453_v34 = vld [vmem:[%s1522_s4 + $0x278] sm:$0xff]  ;;  %v430_v35 = vld [vmem:[%s1522_s4 + $0x1c0] sm:$0xff]  ;;  %v447_v36 = vld [vmem:[%s1522_s4 + $0x248] sm:$0xff] }
  0x49   : > { %494 = vmatprep.subr.mxu0 %v452_v19  ;;  %604 = vmatpush1.msra.mxu1 %v467_v26  ;;  %v424_v37 = vld [vmem:[%s1522_s4 + $0x190] sm:$0xff]  ;;  %v446_v38 = vld [vmem:[%s1522_s4 + $0x240] sm:$0xff]  ;;  %v423_v39 = vld [vmem:[%s1522_s4 + $0x188] sm:$0xff] }
  0x4a   : > { %495 = vmatpush1.msra.mxu0 %v451_v22  ;;  %605 = vmatprep.subr.mxu1 %v461_v28  ;;  %v440_v40 = vld [vmem:[%s1522_s4 + $0x210] sm:$0xff]  ;;  %v417_v41 = vld [vmem:[%s1522_s4 + $0x158] sm:$0xff]  ;;  %v439_v42 = vld [vmem:[%s1522_s4 + $0x208] sm:$0xff] }
  0x4b   : > { %496 = vmatprep.subr.mxu0 %v445_v24  ;;  %606 = vmatpush1.msra.mxu1 %v460_v30  ;;  %v416_v43 = vld [vmem:[%s1522_s4 + $0x150] sm:$0xff]  ;;  %v433_v44 = vld [vmem:[%s1522_s4 + $0x1d8] sm:$0xff]  ;;  %v410_v45 = vld [vmem:[%s1522_s4 + $0x120] sm:$0xff] }
  0x4c   : > { %497 = vmatpush1.msra.mxu0 %v444_v27  ;;  %607 = vmatprep.subr.mxu1 %v454_v32  ;;  %v432_v46 = vld [vmem:[%s1522_s4 + $0x1d0] sm:$0xff]  ;;  %v409_v47 = vld [vmem:[%s1522_s4 + $0x118] sm:$0xff]  ;;  %v426_v48 = vld [vmem:[%s1522_s4 + $0x1a0] sm:$0xff] }
  0x4d   : > { %498 = vmatprep.subr.mxu0 %v438_v29  ;;  %608 = vmatpush1.msra.mxu1 %v453_v34  ;;  %v403_v49 = vld [vmem:[%s1522_s4 + $0xe8] sm:$0xff]  ;;  %v425_v50 = vld [vmem:[%s1522_s4 + $0x198] sm:$0xff]  ;;  %v402_v51 = vld [vmem:[%s1522_s4 + $0xe0] sm:$0xff] }
  0x4e   : > { %499 = vmatpush1.msra.mxu0 %v437_v31  ;;  %609 = vmatprep.subr.mxu1 %v447_v36  ;;  %v419_v52 = vld [vmem:[%s1522_s4 + $0x168] sm:$0xff]  ;;  %v396_v53 = vld [vmem:[%s1522_s4 + $0xb0] sm:$0xff]  ;;  %v418_v54 = vld [vmem:[%s1522_s4 + $0x160] sm:$0xff] }
  0x4f   : > { %500 = vmatprep.subr.mxu0 %v431_v33  ;;  %610 = vmatpush1.msra.mxu1 %v446_v38  ;;  %v395_v55 = vld [vmem:[%s1522_s4 + $0xa8] sm:$0xff]  ;;  %v412_v56 = vld [vmem:[%s1522_s4 + $0x130] sm:$0xff]  ;;  %v389_v57 = vld [vmem:[%s1522_s4 + $0x78] sm:$0xff] }
  0x50   : > { %501 = vmatpush1.msra.mxu0 %v430_v35  ;;  %611 = vmatprep.subr.mxu1 %v440_v40  ;;  %v411_v58 = vld [vmem:[%s1522_s4 + $0x128] sm:$0xff]  ;;  %v388_v59 = vld [vmem:[%s1522_s4 + $0x70] sm:$0xff]  ;;  %v405_v60 = vld [vmem:[%s1522_s4 + $0xf8] sm:$0xff] }
  0x51   : > { %502 = vmatprep.subr.mxu0 %v424_v37  ;;  %612 = vmatpush1.msra.mxu1 %v439_v42  ;;  %v382_v61 = vld [vmem:[%s1522_s4 + $0x40] sm:$0xff]  ;;  %v404_v62 = vld [vmem:[%s1522_s4 + $0xf0] sm:$0xff]  ;;  %v381_v63 = vld [vmem:[%s1522_s4 + $0x38] sm:$0xff] }
  0x52   : > { %503 = vmatpush1.msra.mxu0 %v423_v39  ;;  %613 = vmatprep.subr.mxu1 %v433_v44  ;;  %v398_v0 = vld [vmem:[%s1522_s4 + $0xc0] sm:$0xff]  ;;  %v375_v1 = vld [vmem:[%s1522_s4 + $0x8] sm:$0xff]  ;;  %v397_v2 = vld [vmem:[%s1522_s4 + $0xb8] sm:$0xff] }
  0x53   : > { %504 = vmatprep.subr.mxu0 %v417_v41  ;;  %614 = vmatpush1.msra.mxu1 %v432_v46  ;;  %v374_v3 = vld [vmem:[%s1522_s4] sm:$0xff]  ;;  %v391_v4 = vld [vmem:[%s1522_s4 + $0x88] sm:$0xff]  ;;  %v484_v6 = vld [vmem:[%s1522_s4 + $0x370] sm:$0xff] }
  0x54   : > { %505 = vmatpush1.msra.mxu0 %v416_v43  ;;  %615 = vmatprep.subr.mxu1 %v426_v48  ;;  %v1597_v5 = vld [vmem:[%s1524_s5] sm:$0xff]  ;;  %v483_v7 = vld [vmem:[%s1522_s4 + $0x368] sm:$0xff]  ;;  %v477_v8 = vld [vmem:[%s1522_s4 + $0x338] sm:$0xff] }
  0x55   : > { %506 = vmatprep.subr.mxu0 %v410_v45  ;;  %616 = vmatpush1.msra.mxu1 %v425_v50  ;;  %v390_v9 = vld [vmem:[%s1522_s4 + $0x80] sm:$0xff]  ;;  %v476_v10 = vld [vmem:[%s1522_s4 + $0x330] sm:$0xff]  ;;  %v1608_v12 = vld [vmem:[%s1524_s5 + $0x8] sm:$0xff] }
  0x56   : > { %507 = vmatpush1.msra.mxu0 %v409_v47  ;;  %617 = vmatprep.subr.mxu1 %v419_v52  ;;  %v384_v11 = vld [vmem:[%s1522_s4 + $0x50] sm:$0xff]  ;;  %v470_v14 = vld [vmem:[%s1522_s4 + $0x300] sm:$0xff]  ;;  %v469_v15 = vld [vmem:[%s1522_s4 + $0x2f8] sm:$0xff] }
  0x57   : > { %508 = vmatprep.subr.mxu0 %v403_v49  ;;  %618 = vmatpush1.msra.mxu1 %v418_v54  ;;  %v463_v16 = vld [vmem:[%s1522_s4 + $0x2c8] sm:$0xff]  ;;  %v462_v18 = vld [vmem:[%s1522_s4 + $0x2c0] sm:$0xff]  ;;  %v377_v19 = vld [vmem:[%s1522_s4 + $0x18] sm:$0xff] }
  0x58   : > { %509 = vmatpush1.msra.mxu0 %v402_v51  ;;  %619 = vmatprep.subr.mxu1 %v412_v56  ;;  %v383_v17 = vld [vmem:[%s1522_s4 + $0x48] sm:$0xff]  ;;  %v1619_v20 = vld [vmem:[%s1524_s5 + $0x10] sm:$0xff]  ;;  %v449_v23 = vld [vmem:[%s1522_s4 + $0x258] sm:$0xff] }
  0x59   : > { %510 = vmatprep.subr.mxu0 %v396_v53  ;;  %620 = vmatpush1.msra.mxu1 %v411_v58  ;;  %v456_v21 = vld [vmem:[%s1522_s4 + $0x290] sm:$0xff]  ;;  %v455_v22 = vld [vmem:[%s1522_s4 + $0x288] sm:$0xff]  ;;  %v1629_v26 = vld [vmem:[%s1524_s5 + $0x18] sm:$0xff] }
  0x5a   : > { %511 = vmatpush1.msra.mxu0 %v395_v55  ;;  %621 = vmatprep.subr.mxu1 %v405_v60  ;;  %v376_v24 = vld [vmem:[%s1522_s4 + $0x10] sm:$0xff]  ;;  %v442_v27 = vld [vmem:[%s1522_s4 + $0x220] sm:$0xff]  ;;  %v441_v28 = vld [vmem:[%s1522_s4 + $0x218] sm:$0xff] }
  0x5b   : > { %512 = vmatprep.subr.mxu0 %v389_v57  ;;  %622 = vmatpush1.msra.mxu1 %v404_v62  ;;  %v448_v25 = vld [vmem:[%s1522_s4 + $0x250] sm:$0xff]  ;;  %v435_v29 = vld [vmem:[%s1522_s4 + $0x1e8] sm:$0xff]  ;;  %v485_v30 = vld [vmem:[%s1522_s4 + $0x378] sm:$0xff] }
  0x5c   : > { %513 = vmatpush1.msra.mxu0 %v388_v59  ;;  %623 = vmatprep.subr.mxu1 %v398_v0  ;;  %v434_v31 = vld [vmem:[%s1522_s4 + $0x1e0] sm:$0xff]  ;;  %v428_v33 = vld [vmem:[%s1522_s4 + $0x1b0] sm:$0xff]  ;;  %v427_v34 = vld [vmem:[%s1522_s4 + $0x1a8] sm:$0xff] }
  0x5d   : > { %514 = vmatprep.subr.mxu0 %v382_v61  ;;  %624 = vmatpush1.msra.mxu1 %v397_v2  ;;  %v1640_v32 = vld [vmem:[%s1524_s5 + $0x20] sm:$0xff]  ;;  %v421_v36 = vld [vmem:[%s1522_s4 + $0x178] sm:$0xff]  ;;  %v420_v37 = vld [vmem:[%s1522_s4 + $0x170] sm:$0xff] }
  0x5e   : > { %515 = vmatpush1.msra.mxu0 %v381_v63  ;;  %625 = vmatprep.subr.mxu1 %v391_v4  ;;  %v478_v35 = vld [vmem:[%s1522_s4 + $0x340] sm:$0xff]  ;;  %v471_v38 = vld [vmem:[%s1522_s4 + $0x308] sm:$0xff]  ;;  %v413_v41 = vld [vmem:[%s1522_s4 + $0x138] sm:$0xff] }
  0x5f   : > { %516 = vmatprep.subr.mxu0 %v375_v1  ;;  %626 = vmatpush1.msra.mxu1 %v390_v9  ;;  %v1651_v39 = vld [vmem:[%s1524_s5 + $0x28] sm:$0xff]  ;;  %v414_v40 = vld [vmem:[%s1522_s4 + $0x140] sm:$0xff]  ;;  %v464_v42 = vld [vmem:[%s1522_s4 + $0x2d0] sm:$0xff] }
  0x60   : > { %517 = vmatpush1.msra.mxu0 %v374_v3  ;;  %627 = vmatprep.subr.mxu1 %v384_v11  ;;  %v407_v43 = vld [vmem:[%s1522_s4 + $0x108] sm:$0xff]  ;;  %v406_v44 = vld [vmem:[%s1522_s4 + $0x100] sm:$0xff]  ;;  %v457_v45 = vld [vmem:[%s1522_s4 + $0x298] sm:$0xff] }
  0x61   : > { %551 = vmatmul.mubr.f32.vlgmr.msra.gmra.mxu0 %v1597_v5  ;;  %712 = vmatprep.subr.mxu0 %v484_v6  ;;  %v1664_v46 = vld [vmem:[%s1524_s5 + $0x30] sm:$0xff]  ;;  %v399_v48 = vld [vmem:[%s1522_s4 + $0xc8] sm:$0xff]  ;;  %v450_v49 = vld [vmem:[%s1522_s4 + $0x260] sm:$0xff] }
  0x62   : > { %713 = vmatpush1.msra.mxu0 %v483_v7  ;;  %556 = vmatprep.mubr.f32.mxu0 %v1452_v13  ;;  %v400_v47 = vld [vmem:[%s1522_s4 + $0xd0] sm:$0xff]  ;;  %v393_v50 = vld [vmem:[%s1522_s4 + $0x98] sm:$0xff]  ;;  %v443_v52 = vld [vmem:[%s1522_s4 + $0x228] sm:$0xff] }
  0x63   : > { %714 = vmatprep.subr.mxu0 %v477_v8  ;;  %628 = vmatpush1.msra.mxu1 %v383_v17  ;;  %v392_v51 = vld [vmem:[%s1522_s4 + $0x90] sm:$0xff]  ;;  %v1677_v53 = vld [vmem:[%s1524_s5 + $0x38] sm:$0xff]  ;;  %v386_v54 = vld [vmem:[%s1522_s4 + $0x60] sm:$0xff] }
  0x64   : > { %715 = vmatpush1.msra.mxu0 %v476_v10  ;;  %629 = vmatprep.subr.mxu1 %v377_v19  ;;  %v385_v55 = vld [vmem:[%s1522_s4 + $0x58] sm:$0xff]  ;;  %v436_v56 = vld [vmem:[%s1522_s4 + $0x1f0] sm:$0xff]  ;;  %v379_v57 = vld [vmem:[%s1522_s4 + $0x28] sm:$0xff] }
  0x65   : > { %557 = vmatmul.mubr.f32.gmra.mxu0 %v1608_v12  ;;  %716 = vmatprep.subr.mxu0 %v470_v14  ;;  %v378_v58 = vld [vmem:[%s1522_s4 + $0x20] sm:$0xff]  ;;  %v429_v59 = vld [vmem:[%s1522_s4 + $0x1b8] sm:$0xff]  ;;  %v415_v61 = vld [vmem:[%s1522_s4 + $0x148] sm:$0xff] }
  0x66   : > { %717 = vmatpush1.msra.mxu0 %v469_v15  ;;  %562 = vmatprep.mubr.f32.mxu0 %v1452_v13  ;;  %v422_v60 = vld [vmem:[%s1522_s4 + $0x180] sm:$0xff]  ;;  %v408_v62 = vld [vmem:[%s1522_s4 + $0x110] sm:$0xff]  ;;  %v401_v63 = vld [vmem:[%s1522_s4 + $0xd8] sm:$0xff] }
  0x67   : > { %718 = vmatprep.subr.mxu0 %v463_v16  ;;  %630 = vmatpush1.msra.mxu1 %v376_v24  ;;  %v394_v0 = vld [vmem:[%s1522_s4 + $0xa0] sm:$0xff]  ;;  %v387_v1 = vld [vmem:[%s1522_s4 + $0x68] sm:$0xff]  ;;  %v380_v2 = vld [vmem:[%s1522_s4 + $0x30] sm:$0xff] }
  0x68   : > { %719 = vmatpush1.msra.mxu0 %v462_v18  ;;  %664 = vmatmul.mubr.f32.vlgmr.msra.gmra.mxu1 %v1597_v5  ;;  %v310_v3 = vld [vmem:[#allocation2] sm:$0xff]  ;;  %v317_v8 = vld [vmem:[#allocation2 + $0x38] sm:$0xff]  ;;  %v324_v15 = vld [vmem:[#allocation2 + $0x70] sm:$0xff] }
  0x69   : > { %563 = vmatmul.mubr.f32.gmra.mxu0 %v1619_v20  ;;  %720 = vmatprep.subr.mxu0 %v456_v21  ;;  %v318_v11 = vld [vmem:[#allocation2 + $0x40] sm:$0xff]  ;;  %v325_v17 = vld [vmem:[#allocation2 + $0x78] sm:$0xff]  ;;  %v312_v19 = vld [vmem:[#allocation2 + $0x10] sm:$0xff] }
  0x6a   : > { %721 = vmatpush1.msra.mxu0 %v455_v22  ;;  %568 = vmatprep.mubr.f32.mxu0 %v1452_v13  ;;  %v331_v21 = vld [vmem:[#allocation2 + $0xa8] sm:$0xff]  ;;  %v313_v24 = vld [vmem:[#allocation2 + $0x18] sm:$0xff] }
  0x6b   : > { %722 = vmatprep.subr.mxu0 %v449_v23  ;;  %1287 = vmatprep.subr.mxu1 %v485_v30 }
  0x6c   : > { %723 = vmatpush1.msra.mxu0 %v448_v25  ;;  %1288 = vmatpush3.msra.mxu1 %v485_v30 }
  0x6d   : > { %569 = vmatmul.mubr.f32.gmra.mxu0 %v1629_v26  ;;  %724 = vmatprep.subr.mxu0 %v442_v27 }
  0x6e   : > { %725 = vmatpush1.msra.mxu0 %v441_v28  ;;  %574 = vmatprep.mubr.f32.mxu0 %v1452_v13 }
  0x6f   : > { %726 = vmatprep.subr.mxu0 %v435_v29  ;;  %1289 = vmatprep.subr.mxu1 %v478_v35 }
  0x70   : > { %727 = vmatpush1.msra.mxu0 %v434_v31  ;;  %669 = vmatprep.mubr.f32.mxu1 %v1452_v13  ;;  %v338_v31 = vld [vmem:[#allocation2 + $0xe0] sm:$0xff] }
  0x71   : > { %575 = vmatmul.mubr.f32.gmra.mxu0 %v1640_v32  ;;  %728 = vmatprep.subr.mxu0 %v428_v33 }
  0x72   : > { %729 = vmatpush1.msra.mxu0 %v427_v34  ;;  %1290 = vmatpush3.msra.mxu1 %v478_v35  ;;  %v339_v35 = vld [vmem:[#allocation2 + $0xe8] sm:$0xff] }
  0x73   : > { %730 = vmatprep.subr.mxu0 %v421_v36  ;;  %580 = vmatprep.mubr.f32.mxu0 %v1452_v13 }
  0x74   : > { %670 = vmatmul.mubr.f32.gmra.mxu1 %v1608_v12  ;;  %731 = vmatpush1.msra.mxu0 %v420_v37 }
  0x75   : > { %1291 = vmatprep.subr.mxu1 %v471_v38  ;;  %581 = vmatmul.mubr.f32.gmra.mxu0 %v1651_v39 }
  0x76   : > { %732 = vmatprep.subr.mxu0 %v414_v40  ;;  %1292 = vmatpush3.msra.mxu1 %v471_v38  ;;  %v319_v38 = vld [vmem:[#allocation2 + $0x48] sm:$0xff]  ;;  %v345_v40 = vld [vmem:[#allocation2 + $0x118] sm:$0xff] }
  0x77   : > { %733 = vmatpush1.msra.mxu0 %v413_v41  ;;  %1293 = vmatprep.subr.mxu1 %v464_v42 }
  0x78   : > { %675 = vmatprep.mubr.f32.mxu1 %v1452_v13  ;;  %734 = vmatprep.subr.mxu0 %v407_v43 }
  0x79   : > { %1294 = vmatpush3.msra.mxu1 %v464_v42  ;;  %586 = vmatprep.mubr.f32.mxu0 %v1452_v13  ;;  %v320_v42 = vld [vmem:[#allocation2 + $0x50] sm:$0xff] }
  0x7a   : > { %676 = vmatmul.mubr.f32.gmra.mxu1 %v1619_v20  ;;  %735 = vmatpush1.msra.mxu0 %v406_v44 }
  0x7b   : > { %1295 = vmatprep.subr.mxu1 %v457_v45  ;;  %587 = vmatmul.mubr.f32.gmra.mxu0 %v1664_v46 }
  0x7c   : > { %736 = vmatprep.subr.mxu0 %v400_v47  ;;  %1296 = vmatpush3.msra.mxu1 %v457_v45  ;;  %v346_v45 = vld [vmem:[#allocation2 + $0x120] sm:$0xff] }
  0x7d   : > { %737 = vmatpush1.msra.mxu0 %v399_v48  ;;  %1297 = vmatprep.subr.mxu1 %v450_v49 }
  0x7e   : > { %681 = vmatprep.mubr.f32.mxu1 %v1452_v13  ;;  %738 = vmatprep.subr.mxu0 %v393_v50 }
  0x7f   : > { %1298 = vmatpush3.msra.mxu1 %v450_v49  ;;  %592 = vmatprep.mubr.f32.mxu0 %v1452_v13 }
  0x80   : > { %682 = vmatmul.mubr.f32.gmra.mxu1 %v1629_v26  ;;  %739 = vmatpush1.msra.mxu0 %v392_v51  ;;  %v326_v51 = vld [vmem:[#allocation2 + $0x80] sm:$0xff] }
  0x81   : > { %1299 = vmatprep.subr.mxu1 %v443_v52  ;;  %593 = vmatmul.mubr.f32.gmra.mxu0 %v1677_v53 }
  0x82   : > { %740 = vmatprep.subr.mxu0 %v386_v54  ;;  %1300 = vmatpush3.msra.mxu1 %v443_v52  ;;  %v352_v52 = vld [vmem:[#allocation2 + $0x150] sm:$0xff]  ;;  %v327_v54 = vld [vmem:[#allocation2 + $0x88] sm:$0xff] }
  0x83   : > { %741 = vmatpush1.msra.mxu0 %v385_v55  ;;  %1301 = vmatprep.subr.mxu1 %v436_v56 }
  0x84   : > { %687 = vmatprep.mubr.f32.mxu1 %v1452_v13  ;;  %742 = vmatprep.subr.mxu0 %v379_v57  ;;  %v353_v57 = vld [vmem:[#allocation2 + $0x158] sm:$0xff] }
  0x85   : > { %1302 = vmatpush3.msra.mxu1 %v436_v56  ;;  %743 = vmatpush1.msra.mxu0 %v378_v58 }
  0x86   : > { %688 = vmatmul.mubr.f32.gmra.mxu1 %v1640_v32  ;;  %776 = vmatprep.mubr.f32.mxu0 %v1452_v13 }
  0x87   : > { %1303 = vmatprep.subr.mxu1 %v429_v59  ;;  %777 = vmatmul.mubr.f32.vlgmr.msra.gmra.mxu0 %v1597_v5 }
  0x88   : > { %1304 = vmatpush3.msra.mxu1 %v429_v59  ;;  %693 = vmatprep.mubr.f32.mxu1 %v1452_v13 }
  0x89   : > { %1305 = vmatprep.subr.mxu1 %v422_v60  ;;  %782 = vmatprep.mubr.f32.mxu0 %v1452_v13 }
  0x8a   : > { %1306 = vmatpush3.msra.mxu1 %v422_v60 }
  0x8b   : > { %694 = vmatmul.mubr.f32.gmra.mxu1 %v1651_v39  ;;  %1307 = vmatprep.subr.mxu1 %v415_v61 }
  0x8c   : > { %783 = vmatmul.mubr.f32.gmra.mxu0 %v1608_v12  ;;  %1308 = vmatpush3.msra.mxu1 %v415_v61 }
  0x8d   : > { %1309 = vmatprep.subr.mxu1 %v408_v62  ;;  %699 = vmatprep.mubr.f32.mxu1 %v1452_v13 }
  0x8e   : > { %1310 = vmatpush3.msra.mxu1 %v408_v62  ;;  %788 = vmatprep.mubr.f32.mxu0 %v1452_v13 }
  0x8f   : > { %700 = vmatmul.mubr.f32.gmra.mxu1 %v1664_v46  ;;  %1311 = vmatprep.subr.mxu1 %v401_v63 }
  0x90   : > { %789 = vmatmul.mubr.f32.gmra.mxu0 %v1619_v20  ;;  %1312 = vmatpush3.msra.mxu1 %v401_v63  ;;  %v333_v63 = vld [vmem:[#allocation2 + $0xb8] sm:$0xff] }
  0x91   : > { %1313 = vmatprep.subr.mxu1 %v394_v0  ;;  %705 = vmatprep.mubr.f32.mxu1 %v1452_v13 }
  0x92   : > { %1314 = vmatpush3.msra.mxu1 %v394_v0  ;;  %794 = vmatprep.mubr.f32.mxu0 %v1452_v13  ;;  %v359_v0 = vld [vmem:[#allocation2 + $0x188] sm:$0xff] }
  0x93   : > { %706 = vmatmul.mubr.f32.gmra.mxu1 %v1677_v53  ;;  %1315 = vmatprep.subr.mxu1 %v387_v1 }
  0x94   : > { %795 = vmatmul.mubr.f32.gmra.mxu0 %v1629_v26  ;;  %1316 = vmatpush3.msra.mxu1 %v387_v1 }
  0x95   : > { %1317 = vmatprep.subr.mxu1 %v380_v2  ;;  %1319 = vmatprep.mubr.f32.mxu1 %v1597_v5  ;;  %v311_v5 = vld [vmem:[#allocation2 + $0x8] sm:$0xff] }
  0x96   : > { %1318 = vmatpush3.msra.mxu1 %v380_v2  ;;  %800 = vmatprep.mubr.f32.mxu0 %v1452_v13  ;;  %v334_v2 = vld [vmem:[#allocation2 + $0xc0] sm:$0xff] }
  0x97   : > { %1320 = vmatmul.mubr.f32.vlgmr.msra.gmra.mxu1 %v1608_v12 }
  0x98   : > { %801 = vmatmul.mubr.f32.gmra.mxu0 %v1640_v32  ;;  %1322 = vmatprep.mubr.f32.mxu1 %v1619_v20 }
  0x99   : > { %806 = vmatprep.mubr.f32.mxu0 %v1452_v13 }
  0x9b   : > { %1323 = vmatmul.mubr.f32.gmra.mxu1 %v1629_v26  ;;  %v332_v26 = vld [vmem:[#allocation2 + $0xb0] sm:$0xff] }
  0x9c   : > { %807 = vmatmul.mubr.f32.gmra.mxu0 %v1651_v39  ;;  %1325 = vmatprep.mubr.f32.mxu1 %v1640_v32 }
  0x9d   : > { %812 = vmatprep.mubr.f32.mxu0 %v1452_v13 }
  0x9f   : > { %1326 = vmatmul.mubr.f32.gmra.mxu1 %v1651_v39 }
  0xa0   : > { %813 = vmatmul.mubr.f32.gmra.mxu0 %v1664_v46  ;;  %1328 = vmatprep.mubr.f32.mxu1 %v1664_v46 }
  0xa1   : > { %818 = vmatprep.mubr.f32.mxu0 %v1452_v13 }
  0xa3   : > { %1329 = vmatmul.mubr.f32.gmra.mxu1 %v1677_v53 }
  0xa4   : > { %819 = vmatmul.mubr.f32.gmra.mxu0 %v1677_v53 }
 0x121   : > { %v552_v4 = vpop.f32.mrf.mxu0 }
 0x122   : > { %v930_v6 = vadd.f32 %v552_v4, %v310_v3 }
 0x123   : > { %v554_v7 = vpop.f32.mrf.mxu0 }
 0x124   : > { %986 = vst [vmem:[#allocation2] sm:$0xff] %v930_v6  ;;  %v931_v9 = vadd.f32 %v554_v7, %v311_v5  ;;  %v360_v5 = vld [vmem:[#allocation2 + $0x190] sm:$0xff] }
 0x125   : > { %v558_v10 = vpop.f32.mrf.mxu0 }
 0x126   : > { %987 = vst [vmem:[#allocation2 + $0x8] sm:$0xff] %v931_v9  ;;  %v937_v12 = vadd.f32 %v558_v10, %v317_v8 }
 0x127   : > { %v560_v14 = vpop.f32.mrf.mxu0 }
 0x128   : > { %994 = vst [vmem:[#allocation2 + $0x38] sm:$0xff] %v937_v12  ;;  %v938_v13 = vadd.f32 %v560_v14, %v318_v11  ;;  %v665_v23 = vpop.f32.mrf.mxu1  ;;  %v340_v11 = vld [vmem:[#allocation2 + $0xf0] sm:$0xff]  ;;  %v314_v12 = vld [vmem:[#allocation2 + $0x20] sm:$0xff] }
 0x129   : > { %v564_v16 = vpop.f32.mrf.mxu0  ;;  %v932_v27 = vadd.f32 %v665_v23, %v312_v19 }
 0x12a   : > { %995 = vst [vmem:[#allocation2 + $0x40] sm:$0xff] %v938_v13  ;;  %v944_v18 = vadd.f32 %v564_v16, %v324_v15  ;;  %v667_v29 = vpop.f32.mrf.mxu1  ;;  %v341_v15 = vld [vmem:[#allocation2 + $0xf8] sm:$0xff] }
 0x12b   : > { %v566_v20 = vpop.f32.mrf.mxu0  ;;  %988 = vst [vmem:[#allocation2 + $0x10] sm:$0xff] %v932_v27  ;;  %v933_v32 = vadd.f32 %v667_v29, %v313_v24  ;;  %v321_v24 = vld [vmem:[#allocation2 + $0x58] sm:$0xff]  ;;  %v322_v29 = vld [vmem:[#allocation2 + $0x60] sm:$0xff] }
 0x12c   : > { %1001 = vst [vmem:[#allocation2 + $0x70] sm:$0xff] %v944_v18  ;;  %v945_v22 = vadd.f32 %v566_v20, %v325_v17  ;;  %v315_v17 = vld [vmem:[#allocation2 + $0x28] sm:$0xff] }
 0x12d   : > { %v570_v25 = vpop.f32.mrf.mxu0  ;;  %989 = vst [vmem:[#allocation2 + $0x18] sm:$0xff] %v933_v32  ;;  %v354_v32 = vld [vmem:[#allocation2 + $0x160] sm:$0xff] }
 0x12e   : > { %1002 = vst [vmem:[#allocation2 + $0x78] sm:$0xff] %v945_v22  ;;  %v951_v28 = vadd.f32 %v570_v25, %v331_v21  ;;  %v347_v22 = vld [vmem:[#allocation2 + $0x128] sm:$0xff] }
 0x12f   : > { %v572_v30 = vpop.f32.mrf.mxu0 }
 0x130   : > { %1008 = vst [vmem:[#allocation2 + $0xa8] sm:$0xff] %v951_v28  ;;  %v952_v33 = vadd.f32 %v572_v30, %v332_v26  ;;  %v348_v26 = vld [vmem:[#allocation2 + $0x130] sm:$0xff] }
 0x131   : > { %v576_v34 = vpop.f32.mrf.mxu0 }
 0x132   : > { %1009 = vst [vmem:[#allocation2 + $0xb0] sm:$0xff] %v952_v33  ;;  %v958_v36 = vadd.f32 %v576_v34, %v338_v31 }
 0x133   : > { %v578_v37 = vpop.f32.mrf.mxu0 }
 0x134   : > { %1015 = vst [vmem:[#allocation2 + $0xe0] sm:$0xff] %v958_v36  ;;  %v959_v39 = vadd.f32 %v578_v37, %v339_v35  ;;  %v671_v41 = vpop.f32.mrf.mxu1  ;;  %v328_v35 = vld [vmem:[#allocation2 + $0x90] sm:$0xff] }
 0x135   : > { %v939_v43 = vadd.f32 %v671_v41, %v319_v38  ;;  %v582_v44 = vpop.f32.mrf.mxu0  ;;  %v355_v38 = vld [vmem:[#allocation2 + $0x168] sm:$0xff]  ;;  %v329_v41 = vld [vmem:[#allocation2 + $0x98] sm:$0xff] }
 0x136   : > { %1016 = vst [vmem:[#allocation2 + $0xe8] sm:$0xff] %v959_v39  ;;  %v965_v46 = vadd.f32 %v582_v44, %v345_v40  ;;  %v673_v47 = vpop.f32.mrf.mxu1  ;;  %v361_v44 = vld [vmem:[#allocation2 + $0x198] sm:$0xff] }
 0x137   : > { %996 = vst [vmem:[#allocation2 + $0x48] sm:$0xff] %v939_v43  ;;  %v940_v48 = vadd.f32 %v673_v47, %v320_v42  ;;  %v584_v49 = vpop.f32.mrf.mxu0  ;;  %v335_v47 = vld [vmem:[#allocation2 + $0xc8] sm:$0xff] }
 0x138   : > { %1022 = vst [vmem:[#allocation2 + $0x118] sm:$0xff] %v965_v46  ;;  %v966_v50 = vadd.f32 %v584_v49, %v346_v45 }
 0x139   : > { %997 = vst [vmem:[#allocation2 + $0x50] sm:$0xff] %v940_v48 }
 0x13a   : > { %1023 = vst [vmem:[#allocation2 + $0x120] sm:$0xff] %v966_v50  ;;  %v677_v53 = vpop.f32.mrf.mxu1  ;;  %v362_v50 = vld [vmem:[#allocation2 + $0x1a0] sm:$0xff] }
 0x13b   : > { %v946_v55 = vadd.f32 %v677_v53, %v326_v51  ;;  %v588_v56 = vpop.f32.mrf.mxu0  ;;  %v336_v53 = vld [vmem:[#allocation2 + $0xd0] sm:$0xff] }
 0x13c   : > { %v972_v58 = vadd.f32 %v588_v56, %v352_v52  ;;  %v679_v59 = vpop.f32.mrf.mxu1  ;;  %v323_v56 = vld [vmem:[#allocation2 + $0x68] sm:$0xff] }
 0x13d   : > { %1003 = vst [vmem:[#allocation2 + $0x80] sm:$0xff] %v946_v55  ;;  %v947_v60 = vadd.f32 %v679_v59, %v327_v54  ;;  %v590_v61 = vpop.f32.mrf.mxu0  ;;  %v342_v59 = vld [vmem:[#allocation2 + $0x100] sm:$0xff] }
 0x13e   : > { %1029 = vst [vmem:[#allocation2 + $0x150] sm:$0xff] %v972_v58  ;;  %v973_v62 = vadd.f32 %v590_v61, %v353_v57 }
 0x13f   : > { %1004 = vst [vmem:[#allocation2 + $0x88] sm:$0xff] %v947_v60 }
 0x140   : > { %1030 = vst [vmem:[#allocation2 + $0x158] sm:$0xff] %v973_v62  ;;  %v683_v1 = vpop.f32.mrf.mxu1  ;;  %v316_v62 = vld [vmem:[#allocation2 + $0x30] sm:$0xff] }
 0x141   : > { %v953_v3 = vadd.f32 %v683_v1, %v333_v63  ;;  %v594_v4 = vpop.f32.mrf.mxu0  ;;  %v343_v1 = vld [vmem:[#allocation2 + $0x108] sm:$0xff] }
 0x142   : > { %v979_v6 = vadd.f32 %v594_v4, %v359_v0  ;;  %v685_v7 = vpop.f32.mrf.mxu1  ;;  %v337_v4 = vld [vmem:[#allocation2 + $0xd8] sm:$0xff] }
 0x143   : > { %1010 = vst [vmem:[#allocation2 + $0xb8] sm:$0xff] %v953_v3  ;;  %v954_v8 = vadd.f32 %v685_v7, %v334_v2  ;;  %v596_v9 = vpop.f32.mrf.mxu0  ;;  %v349_v7 = vld [vmem:[#allocation2 + $0x138] sm:$0xff] }
 0x144   : > { %1036 = vst [vmem:[#allocation2 + $0x188] sm:$0xff] %v979_v6  ;;  %v980_v10 = vadd.f32 %v596_v9, %v360_v5 }
 0x145   : > { %1011 = vst [vmem:[#allocation2 + $0xc0] sm:$0xff] %v954_v8 }
 0x146   : > { %1037 = vst [vmem:[#allocation2 + $0x190] sm:$0xff] %v980_v10  ;;  %v689_v14 = vpop.f32.mrf.mxu1  ;;  %v330_v10 = vld [vmem:[#allocation2 + $0xa0] sm:$0xff] }
 0x147   : > { %v960_v13 = vadd.f32 %v689_v14, %v340_v11  ;;  %v778_v16 = vpop.f32.mrf.mxu0  ;;  %v350_v14 = vld [vmem:[#allocation2 + $0x140] sm:$0xff] }
 0x148   : > { %v934_v18 = vadd.f32 %v778_v16, %v314_v12  ;;  %v691_v19 = vpop.f32.mrf.mxu1  ;;  %v351_v16 = vld [vmem:[#allocation2 + $0x148] sm:$0xff] }
 0x149   : > { %1017 = vst [vmem:[#allocation2 + $0xf0] sm:$0xff] %v960_v13  ;;  %v961_v20 = vadd.f32 %v691_v19, %v341_v15  ;;  %v780_v21 = vpop.f32.mrf.mxu0  ;;  %v356_v19 = vld [vmem:[#allocation2 + $0x170] sm:$0xff] }
 0x14a   : > { %990 = vst [vmem:[#allocation2 + $0x20] sm:$0xff] %v934_v18  ;;  %v935_v23 = vadd.f32 %v780_v21, %v315_v17 }
 0x14b   : > { %1018 = vst [vmem:[#allocation2 + $0xf8] sm:$0xff] %v961_v20  ;;  %v695_v25 = vpop.f32.mrf.mxu1 }
 0x14c   : > { %991 = vst [vmem:[#allocation2 + $0x28] sm:$0xff] %v935_v23  ;;  %v967_v27 = vadd.f32 %v695_v25, %v347_v22  ;;  %v784_v28 = vpop.f32.mrf.mxu0  ;;  %v344_v22 = vld [vmem:[#allocation2 + $0x110] sm:$0xff]  ;;  %v357_v25 = vld [vmem:[#allocation2 + $0x178] sm:$0xff] }
 0x14d   : > { %v941_v30 = vadd.f32 %v784_v28, %v321_v24  ;;  %v697_v31 = vpop.f32.mrf.mxu1  ;;  %v365_v28 = vld [vmem:[#allocation2 + $0x1b8] sm:$0xff] }
 0x14e   : > { %1024 = vst [vmem:[#allocation2 + $0x128] sm:$0xff] %v967_v27  ;;  %v968_v33 = vadd.f32 %v697_v31, %v348_v26  ;;  %v786_v34 = vpop.f32.mrf.mxu0  ;;  %v363_v31 = vld [vmem:[#allocation2 + $0x1a8] sm:$0xff] }
 0x14f   : > { %998 = vst [vmem:[#allocation2 + $0x58] sm:$0xff] %v941_v30  ;;  %v942_v36 = vadd.f32 %v786_v34, %v322_v29  ;;  %v701_v37 = vpop.f32.mrf.mxu1  ;;  %v358_v34 = vld [vmem:[#allocation2 + $0x180] sm:$0xff] }
 0x150   : > { %1025 = vst [vmem:[#allocation2 + $0x130] sm:$0xff] %v968_v33  ;;  %v974_v39 = vadd.f32 %v701_v37, %v354_v32  ;;  %v790_v40 = vpop.f32.mrf.mxu0  ;;  %v364_v37 = vld [vmem:[#allocation2 + $0x1b0] sm:$0xff] }
 0x151   : > { %999 = vst [vmem:[#allocation2 + $0x60] sm:$0xff] %v942_v36  ;;  %v948_v42 = vadd.f32 %v790_v40, %v328_v35  ;;  %v703_v43 = vpop.f32.mrf.mxu1 }
 0x152   : > { %1031 = vst [vmem:[#allocation2 + $0x160] sm:$0xff] %v974_v39  ;;  %v975_v45 = vadd.f32 %v703_v43, %v355_v38  ;;  %v792_v46 = vpop.f32.mrf.mxu0 }
 0x153   : > { %1005 = vst [vmem:[#allocation2 + $0x90] sm:$0xff] %v948_v42  ;;  %v949_v48 = vadd.f32 %v792_v46, %v329_v41  ;;  %v707_v49 = vpop.f32.mrf.mxu1 }
 0x154   : > { %1032 = vst [vmem:[#allocation2 + $0x168] sm:$0xff] %v975_v45  ;;  %v981_v51 = vadd.f32 %v707_v49, %v361_v44  ;;  %v796_v52 = vpop.f32.mrf.mxu0 }
 0x155   : > { %1006 = vst [vmem:[#allocation2 + $0x98] sm:$0xff] %v949_v48  ;;  %v955_v54 = vadd.f32 %v796_v52, %v335_v47  ;;  %v709_v55 = vpop.f32.mrf.mxu1 }
 0x156   : > { %1038 = vst [vmem:[#allocation2 + $0x198] sm:$0xff] %v981_v51  ;;  %v982_v57 = vadd.f32 %v709_v55, %v362_v50  ;;  %v798_v58 = vpop.f32.mrf.mxu0 }
 0x157   : > { %1012 = vst [vmem:[#allocation2 + $0xc8] sm:$0xff] %v955_v54  ;;  %v956_v60 = vadd.f32 %v798_v58, %v336_v53  ;;  %v1321_v61 = vpop.f32.mrf.mxu1 }
 0x158   : > { %1039 = vst [vmem:[#allocation2 + $0x1a0] sm:$0xff] %v982_v57  ;;  %v943_v63 = vadd.f32 %v1321_v61, %v323_v56  ;;  %v802_v0 = vpop.f32.mrf.mxu0 }
 0x159   : > { %1013 = vst [vmem:[#allocation2 + $0xd0] sm:$0xff] %v956_v60  ;;  %v962_v2 = vadd.f32 %v802_v0, %v342_v59  ;;  %v891_v3 = vpop.f32.mrf.mxu1 }
 0x15a   : > { %1000 = vst.msk [vmem:[#allocation2 + $0x68] sm:$0xff] %vm992_vm1, %v943_v63  ;;  %v936_v5 = vadd.f32 %v891_v3, %v316_v62  ;;  %v804_v6 = vpop.f32.mrf.mxu0 }
 0x15b   : > { %1019 = vst [vmem:[#allocation2 + $0x100] sm:$0xff] %v962_v2  ;;  %v963_v8 = vadd.f32 %v804_v6, %v343_v1  ;;  %v1324_v9 = vpop.f32.mrf.mxu1 }
 0x15c   : > { %993 = vst.msk [vmem:[#allocation2 + $0x30] sm:$0xff] %vm992_vm1, %v936_v5  ;;  %v957_v11 = vadd.f32 %v1324_v9, %v337_v4  ;;  %v808_v12 = vpop.f32.mrf.mxu0 }
 0x15d   : > { %1020 = vst [vmem:[#allocation2 + $0x108] sm:$0xff] %v963_v8  ;;  %v969_v15 = vadd.f32 %v808_v12, %v349_v7  ;;  %v901_v13 = vpop.f32.mrf.mxu1 }
 0x15e   : > { %1014 = vst.msk [vmem:[#allocation2 + $0xd8] sm:$0xff] %vm992_vm1, %v957_v11  ;;  %v950_v17 = vadd.f32 %v901_v13, %v330_v10  ;;  %v810_v18 = vpop.f32.mrf.mxu0 }
 0x15f   : > { %1026 = vst [vmem:[#allocation2 + $0x138] sm:$0xff] %v969_v15  ;;  %v970_v20 = vadd.f32 %v810_v18, %v350_v14  ;;  %v1327_v21 = vpop.f32.mrf.mxu1 }
 0x160   : > { %1007 = vst.msk [vmem:[#allocation2 + $0xa0] sm:$0xff] %vm992_vm1, %v950_v17  ;;  %v971_v23 = vadd.f32 %v1327_v21, %v351_v16  ;;  %v814_v24 = vpop.f32.mrf.mxu0 }
 0x161   : > { %1027 = vst [vmem:[#allocation2 + $0x140] sm:$0xff] %v970_v20  ;;  %v976_v26 = vadd.f32 %v814_v24, %v356_v19  ;;  %v911_v27 = vpop.f32.mrf.mxu1 }
 0x162   : > { %1028 = vst.msk [vmem:[#allocation2 + $0x148] sm:$0xff] %vm992_vm1, %v971_v23  ;;  %v964_v29 = vadd.f32 %v911_v27, %v344_v22  ;;  %v816_v30 = vpop.f32.mrf.mxu0 }
 0x163   : > { %1033 = vst [vmem:[#allocation2 + $0x170] sm:$0xff] %v976_v26  ;;  %v977_v32 = vadd.f32 %v816_v30, %v357_v25  ;;  %v1330_v33 = vpop.f32.mrf.mxu1 }
 0x164   : > { %1021 = vst.msk [vmem:[#allocation2 + $0x110] sm:$0xff] %vm992_vm1, %v964_v29  ;;  %v985_v35 = vadd.f32 %v1330_v33, %v365_v28  ;;  %v820_v36 = vpop.f32.mrf.mxu0 }
 0x165   : > { %1034 = vst [vmem:[#allocation2 + $0x178] sm:$0xff] %v977_v32  ;;  %v983_v38 = vadd.f32 %v820_v36, %v363_v31  ;;  %v921_v39 = vpop.f32.mrf.mxu1  ;;  %1046 = sbr.rel (%p1258_p11) target bundleno = 391 (0x187), region = 74 }
 0x166   : > { %1042 = vst.msk [vmem:[#allocation2 + $0x1b8] sm:$0xff] %vm992_vm1, %v985_v35  ;;  %v978_v40 = vadd.f32 %v921_v39, %v358_v34  ;;  %v822_v41 = vpop.f32.mrf.mxu0 }
 0x167   : > { %1040 = vst [vmem:[#allocation2 + $0x1a8] sm:$0xff] %v983_v38  ;;  %v984_v42 = vadd.f32 %v822_v41, %v364_v37 }
 0x168   : > { %1035 = vst.msk [vmem:[#allocation2 + $0x180] sm:$0xff] %vm992_vm1, %v978_v40 }
 0x169   : > { %1041 = vst [vmem:[#allocation2 + $0x1b0] sm:$0xff] %v984_v42 }
 0x16a   : > { %v1047_v43 = vld [vmem:[#allocation2] sm:$0xff]  ;;  %v1048_v44 = vld [vmem:[#allocation2 + $0x8] sm:$0xff]  ;;  %v1049_v45 = vld [vmem:[#allocation2 + $0x10] sm:$0xff] }
 0x16b   : > { %1103 = vst [vmem:[#allocation4] sm:$0xff] %v1047_v43  ;;  %1104 = vst [vmem:[#allocation4 + $0x8] sm:$0xff] %v1048_v44  ;;  %v1050_v46 = vld [vmem:[#allocation2 + $0x18] sm:$0xff]  ;;  %v1051_v47 = vld [vmem:[#allocation2 + $0x20] sm:$0xff] }
 0x16c   : > { %1105 = vst [vmem:[#allocation4 + $0x10] sm:$0xff] %v1049_v45  ;;  %v1052_v48 = vld [vmem:[#allocation2 + $0x28] sm:$0xff]  ;;  %1106 = vst [vmem:[#allocation4 + $0x18] sm:$0xff] %v1050_v46  ;;  %v1053_v49 = vld [vmem:[#allocation2 + $0x30] sm:$0xff] }
 0x16d   : > { %1107 = vst [vmem:[#allocation4 + $0x20] sm:$0xff] %v1051_v47  ;;  %1108 = vst [vmem:[#allocation4 + $0x28] sm:$0xff] %v1052_v48  ;;  %v1054_v50 = vld [vmem:[#allocation2 + $0x38] sm:$0xff]  ;;  %v1055_v51 = vld [vmem:[#allocation2 + $0x40] sm:$0xff] }
 0x16e   : > { %1109 = vst.msk [vmem:[#allocation4 + $0x30] sm:$0xff] %vm992_vm1, %v1053_v49  ;;  %1110 = vst [vmem:[#allocation4 + $0x38] sm:$0xff] %v1054_v50  ;;  %v1056_v52 = vld [vmem:[#allocation2 + $0x48] sm:$0xff]  ;;  %v1057_v53 = vld [vmem:[#allocation2 + $0x50] sm:$0xff] }
 0x16f   : > { %1111 = vst [vmem:[#allocation4 + $0x40] sm:$0xff] %v1055_v51  ;;  %v1058_v54 = vld [vmem:[#allocation2 + $0x58] sm:$0xff]  ;;  %1112 = vst [vmem:[#allocation4 + $0x48] sm:$0xff] %v1056_v52  ;;  %v1059_v55 = vld [vmem:[#allocation2 + $0x60] sm:$0xff] }
 0x170   : > { %1113 = vst [vmem:[#allocation4 + $0x50] sm:$0xff] %v1057_v53  ;;  %1114 = vst [vmem:[#allocation4 + $0x58] sm:$0xff] %v1058_v54  ;;  %v1060_v56 = vld [vmem:[#allocation2 + $0x68] sm:$0xff]  ;;  %v1061_v57 = vld [vmem:[#allocation2 + $0x70] sm:$0xff] }
 0x171   : > { %1115 = vst [vmem:[#allocation4 + $0x60] sm:$0xff] %v1059_v55  ;;  %1116 = vst.msk [vmem:[#allocation4 + $0x68] sm:$0xff] %vm992_vm1, %v1060_v56  ;;  %v1062_v58 = vld [vmem:[#allocation2 + $0x78] sm:$0xff]  ;;  %v1063_v59 = vld [vmem:[#allocation2 + $0x80] sm:$0xff] }
 0x172   : > { %1117 = vst [vmem:[#allocation4 + $0x70] sm:$0xff] %v1061_v57  ;;  %v1064_v60 = vld [vmem:[#allocation2 + $0x88] sm:$0xff]  ;;  %1118 = vst [vmem:[#allocation4 + $0x78] sm:$0xff] %v1062_v58  ;;  %v1065_v61 = vld [vmem:[#allocation2 + $0x90] sm:$0xff] }
 0x173   : > { %1119 = vst [vmem:[#allocation4 + $0x80] sm:$0xff] %v1063_v59  ;;  %1120 = vst [vmem:[#allocation4 + $0x88] sm:$0xff] %v1064_v60  ;;  %v1066_v62 = vld [vmem:[#allocation2 + $0x98] sm:$0xff]  ;;  %v1067_v63 = vld [vmem:[#allocation2 + $0xa0] sm:$0xff] }
 0x174   : > { %1121 = vst [vmem:[#allocation4 + $0x90] sm:$0xff] %v1065_v61  ;;  %1122 = vst [vmem:[#allocation4 + $0x98] sm:$0xff] %v1066_v62  ;;  %v1068_v0 = vld [vmem:[#allocation2 + $0xa8] sm:$0xff]  ;;  %v1069_v1 = vld [vmem:[#allocation2 + $0xb0] sm:$0xff] }
 0x175   : > { %1123 = vst.msk [vmem:[#allocation4 + $0xa0] sm:$0xff] %vm992_vm1, %v1067_v63  ;;  %v1070_v2 = vld [vmem:[#allocation2 + $0xb8] sm:$0xff]  ;;  %1124 = vst [vmem:[#allocation4 + $0xa8] sm:$0xff] %v1068_v0  ;;  %v1071_v3 = vld [vmem:[#allocation2 + $0xc0] sm:$0xff] }
 0x176   : > { %1125 = vst [vmem:[#allocation4 + $0xb0] sm:$0xff] %v1069_v1  ;;  %1126 = vst [vmem:[#allocation4 + $0xb8] sm:$0xff] %v1070_v2  ;;  %v1072_v4 = vld [vmem:[#allocation2 + $0xc8] sm:$0xff]  ;;  %v1073_v5 = vld [vmem:[#allocation2 + $0xd0] sm:$0xff] }
 0x177   : > { %1127 = vst [vmem:[#allocation4 + $0xc0] sm:$0xff] %v1071_v3  ;;  %1128 = vst [vmem:[#allocation4 + $0xc8] sm:$0xff] %v1072_v4  ;;  %v1074_v6 = vld [vmem:[#allocation2 + $0xd8] sm:$0xff]  ;;  %v1075_v7 = vld [vmem:[#allocation2 + $0xe0] sm:$0xff] }
 0x178   : > { %1129 = vst [vmem:[#allocation4 + $0xd0] sm:$0xff] %v1073_v5  ;;  %v1076_v8 = vld [vmem:[#allocation2 + $0xe8] sm:$0xff]  ;;  %1130 = vst.msk [vmem:[#allocation4 + $0xd8] sm:$0xff] %vm992_vm1, %v1074_v6  ;;  %v1077_v9 = vld [vmem:[#allocation2 + $0xf0] sm:$0xff] }
 0x179   : > { %1131 = vst [vmem:[#allocation4 + $0xe0] sm:$0xff] %v1075_v7  ;;  %1132 = vst [vmem:[#allocation4 + $0xe8] sm:$0xff] %v1076_v8  ;;  %v1078_v10 = vld [vmem:[#allocation2 + $0xf8] sm:$0xff]  ;;  %v1079_v11 = vld [vmem:[#allocation2 + $0x100] sm:$0xff] }
 0x17a   : > { %1133 = vst [vmem:[#allocation4 + $0xf0] sm:$0xff] %v1077_v9  ;;  %1134 = vst [vmem:[#allocation4 + $0xf8] sm:$0xff] %v1078_v10  ;;  %v1080_v12 = vld [vmem:[#allocation2 + $0x108] sm:$0xff]  ;;  %v1081_v14 = vld [vmem:[#allocation2 + $0x110] sm:$0xff] }
 0x17b   : > { %1135 = vst [vmem:[#allocation4 + $0x100] sm:$0xff] %v1079_v11  ;;  %v1082_v15 = vld [vmem:[#allocation2 + $0x118] sm:$0xff]  ;;  %1136 = vst [vmem:[#allocation4 + $0x108] sm:$0xff] %v1080_v12  ;;  %v1083_v13 = vld [vmem:[#allocation2 + $0x120] sm:$0xff] }
 0x17c   : > { %1137 = vst.msk [vmem:[#allocation4 + $0x110] sm:$0xff] %vm992_vm1, %v1081_v14  ;;  %1138 = vst [vmem:[#allocation4 + $0x118] sm:$0xff] %v1082_v15  ;;  %v1084_v16 = vld [vmem:[#allocation2 + $0x128] sm:$0xff]  ;;  %v1085_v17 = vld [vmem:[#allocation2 + $0x130] sm:$0xff] }
 0x17d   : > { %1139 = vst [vmem:[#allocation4 + $0x120] sm:$0xff] %v1083_v13  ;;  %1140 = vst [vmem:[#allocation4 + $0x128] sm:$0xff] %v1084_v16  ;;  %v1086_v18 = vld [vmem:[#allocation2 + $0x138] sm:$0xff]  ;;  %v1087_v19 = vld [vmem:[#allocation2 + $0x140] sm:$0xff] }
 0x17e   : > { %1141 = vst [vmem:[#allocation4 + $0x130] sm:$0xff] %v1085_v17  ;;  %v1088_v20 = vld [vmem:[#allocation2 + $0x148] sm:$0xff]  ;;  %1142 = vst [vmem:[#allocation4 + $0x138] sm:$0xff] %v1086_v18  ;;  %v1089_v21 = vld [vmem:[#allocation2 + $0x150] sm:$0xff] }
 0x17f   : > { %1143 = vst [vmem:[#allocation4 + $0x140] sm:$0xff] %v1087_v19  ;;  %1144 = vst.msk [vmem:[#allocation4 + $0x148] sm:$0xff] %vm992_vm1, %v1088_v20  ;;  %v1090_v22 = vld [vmem:[#allocation2 + $0x158] sm:$0xff]  ;;  %v1091_v23 = vld [vmem:[#allocation2 + $0x160] sm:$0xff] }
 0x180   : > { %1145 = vst [vmem:[#allocation4 + $0x150] sm:$0xff] %v1089_v21  ;;  %1146 = vst [vmem:[#allocation4 + $0x158] sm:$0xff] %v1090_v22  ;;  %v1092_v24 = vld [vmem:[#allocation2 + $0x168] sm:$0xff]  ;;  %v1093_v25 = vld [vmem:[#allocation2 + $0x170] sm:$0xff] }
 0x181   : > { %1147 = vst [vmem:[#allocation4 + $0x160] sm:$0xff] %v1091_v23  ;;  %v1094_v26 = vld [vmem:[#allocation2 + $0x178] sm:$0xff]  ;;  %1148 = vst [vmem:[#allocation4 + $0x168] sm:$0xff] %v1092_v24  ;;  %v1095_v27 = vld [vmem:[#allocation2 + $0x180] sm:$0xff] }
 0x182   : > { %1149 = vst [vmem:[#allocation4 + $0x170] sm:$0xff] %v1093_v25  ;;  %1150 = vst [vmem:[#allocation4 + $0x178] sm:$0xff] %v1094_v26  ;;  %v1096_v28 = vld [vmem:[#allocation2 + $0x188] sm:$0xff]  ;;  %v1097_v29 = vld [vmem:[#allocation2 + $0x190] sm:$0xff] }
 0x183   : > { %1151 = vst.msk [vmem:[#allocation4 + $0x180] sm:$0xff] %vm992_vm1, %v1095_v27  ;;  %1152 = vst [vmem:[#allocation4 + $0x188] sm:$0xff] %v1096_v28  ;;  %v1098_v30 = vld [vmem:[#allocation2 + $0x198] sm:$0xff]  ;;  %v1099_v31 = vld [vmem:[#allocation2 + $0x1a0] sm:$0xff] }
 0x184   : > { %1153 = vst [vmem:[#allocation4 + $0x190] sm:$0xff] %v1097_v29  ;;  %v1100_v32 = vld [vmem:[#allocation2 + $0x1a8] sm:$0xff]  ;;  %1154 = vst [vmem:[#allocation4 + $0x198] sm:$0xff] %v1098_v30  ;;  %v1101_v33 = vld [vmem:[#allocation2 + $0x1b0] sm:$0xff] }
 0x185   : > { %1155 = vst [vmem:[#allocation4 + $0x1a0] sm:$0xff] %v1099_v31  ;;  %1156 = vst [vmem:[#allocation4 + $0x1a8] sm:$0xff] %v1100_v32  ;;  %v1102_v34 = vld [vmem:[#allocation2 + $0x1b8] sm:$0xff] }
 0x186   : > { %1157 = vst [vmem:[#allocation4 + $0x1b0] sm:$0xff] %v1101_v33  ;;  %1158 = vst.msk [vmem:[#allocation4 + $0x1b8] sm:$0xff] %vm992_vm1, %v1102_v34 }
 0x187 PF: > { %p1746_p12 = scmp.eq.s32.totalorder %s1248_s14, 2  ;;  %s1453_s7 = smov [#allocation4]  }
 0x188   : > { %s1168_s8 = sshll.u32 %s1453_s7, 4  ;;  %s1169_s8 = int_to_ptr.vmem [resolvable:$true] %s1168_s8 }
 0x189   : > { %s1383_s9 = scalar_lea.vmem %s1169_s8, 7168  ;;  %p1390_p2 = scmp.lt.s32.totalorder %s1169_s8, %s1169_s8 }
 0x18a   : > { %p1384_p13 = scmp.ne.s32.totalorder %s1169_s8, %s1383_s9  ;;  %p1391_p3 = scmp.lt.s32.totalorder %s1383_s9, %s1383_s9 }
 0x18c   : > { %p1385_p0 = pnand %p1384_p13, %p1746_p12  ;;  %p1392_p4 = por %p1391_p3, %p1390_p2 }
 0x18e   : > { %p1386_p1 = pneg %p1385_p0 }
 0x190   : > { %p1393_p5 = pnand %p1392_p4, %p1386_p1 }
 0x192   : > { %1396 = shalt.err (!%p1393_p5)
}
 0x193   : > { %s1454_s11 = smov 896   ;;  %s1455_s14 = smov 56  }
 0x194   : > { %1333 = dma.vmem_to_hbm [thread:$0]  (%p1746_p12), %s1169_s8, 7168, %s1778_s2, [#allocation5], %s1454_s11, %s1454_s11, %s1455_s14  }
 0x195   : > { %1428 = dma.done.wait (%p1746_p12), [#allocation5], 7168  }
 0x196   : > { %1430 = vsyncadd (%p1746_p12), [#allocation5], 4294960128 }
 0x197 PF: > { %s13_s13 = sadd.s32 1, %s1449_s13   ;;  %s1780_s9 = smov %s1437_s10 }
 0x198   : > { %p10_p6 = scmp.ge.s32.totalorder %s13_s13, 5   ;;  %s1781_s10 = smov %s1507_s18 }
 0x199   : > { %s1782_s11 = smov %s1445_s12  ;;  %s1783_s12 = smov %s1785_s15 }
 0x19a   :  { %12 = sbr.rel (!%p10_p6) target bundleno = 3 (0x3), region = 110 }
 0x19f   :  { %1184 = vsyncpa [#allocation5], 1 }
 0x1a0   :  { %1186 = vsyncpa [#allocation5 + $0x1], 1 }

</bundles_post_ra>
